<compile_context>
chip_gen: v6e
topology: v6e:2x2x1
jax: 0.10.0
libtpu: 0.0.40
codegen_flags: <defaults>
</compile_context>

<pallas_src>
import functools
import math

import jax
import jax.numpy as jnp
from jax.experimental import pallas as pl
from jax.experimental.pallas import tpu as pltpu

LANE = 128


def _round_up(x, m):
    return (x + m - 1) // m * m


def _cdiv(a, b):
    return -(-a // b)


def _pick_act_dtype():
    """bf16 elementwise math only where the VPU/EUP support it (v6e / v7x)."""
    try:
        kind = jax.devices()[0].device_kind.lower()
    except Exception:
        return jnp.float32
    if any(tag in kind for tag in ("v2", "v3", "v4", "v5")):
        return jnp.float32
    return jnp.bfloat16


_ACT_DTYPE = _pick_act_dtype()


def mlp_al_eval_kernel(x_ref,
                       wf0_ref, wf1_ref, wf2_ref,        # f of layers 0,1,2 (ELU encoders)
                       wb2a_ref, wb2b_ref,               # bridge b of last layer
                       winv2_ref, winv1_ref, winv0_ref,  # inverse decoders, layers 2,1,0
                       out_ref, *, act_dtype):
    # Activations are (features, batch_tile): batch on the lane axis, tiny
    # feature dims on the sublane / LHS-row axis.  Weights are PyTorch
    # (out_features, in_features), so h_next^T = W @ h^T directly.
    def dot(w_ref, a):
        # bf16 x bf16 operands, f32 accumulation on the MXU.
        return jnp.dot(w_ref[...], a.astype(jnp.bfloat16),
                       preferred_element_type=jnp.float32)

    def elu(z):
        # nn.ELU(alpha=1.0); clamp before exp so the untaken branch can't overflow.
        z = z.astype(act_dtype)
        return jnp.where(z > 0, z, jnp.exp(jnp.minimum(z, 0.0)) - 1.0)

    def sigmoid(z):
        # EUP-friendly sigmoid: one tanh instead of exp + add + divide.
        z = z.astype(act_dtype)
        return 0.5 * (jnp.tanh(0.5 * z) + 1.0)

    h = x_ref[...]                             # (input_shape, tile_b), bf16
    # forward (encoder) pass: _s = f_l(_s) for l = 0 .. L-2, then f of last layer
    h = elu(dot(wf0_ref, h))
    h = elu(dot(wf1_ref, h))
    h = elu(dot(wf2_ref, h))
    # bridge_forward(_s) = inv(b(f(_s)))
    t = sigmoid(dot(wb2a_ref, h))
    t = sigmoid(dot(wb2b_ref, t))
    t = sigmoid(dot(winv2_ref, t))
    # backward (decoder) pass: _t0 = inv_l(_t0) for l = L-2 .. 0
    t = sigmoid(dot(winv1_ref, t))
    out_ref[...] = sigmoid(dot(winv0_ref, t)).astype(out_ref.dtype)


def prepare_params(params):
    """One-time prep (NOT per call): keep PyTorch (out, in) layout and cast to
    bf16 for the MXU.  No transpose / padding needed in the transposed
    (batch-on-lanes) formulation."""
    return [jnp.asarray(w, jnp.float32).astype(jnp.bfloat16) for w in params]


@functools.partial(jax.jit, static_argnames=("input_shape", "out_shape", "tile_b"))
def mlp_classifier_eval(x, weights, input_shape, out_shape, tile_b=1024):
    """x: any shape that flattens to (-1, input_shape).
    weights: output of prepare_params. Returns (batch, out_shape) f32."""
    x2d = x.reshape(-1, input_shape)
    batch = x2d.shape[0]
    # Batch goes on the lane axis: kernel input is x^T = (input_shape, batch).
    xT = x2d.astype(jnp.bfloat16).T

    # Batch tile: multiple of 128 lanes; cap so large batches give >= ~4 grid
    # steps (lets the 2 TensorCores on v7x both do work via "parallel").
    tile_b = max(LANE, min(tile_b, _round_up(_cdiv(batch, 4), LANE)))
    padded_batch = _round_up(batch, tile_b)
    if padded_batch != batch:
        xT = jnp.pad(xT, ((0, 0), (0, padded_batch - batch)))

    grid = (padded_batch // tile_b,)
    x_spec = pl.BlockSpec((input_shape, tile_b), lambda i: (0, i))
    # Constant block index -> weights stay VMEM-resident across grid steps.
    w_specs = [pl.BlockSpec(w.shape, lambda i: (0, 0)) for w in weights]
    out_spec = pl.BlockSpec((out_shape, tile_b), lambda i: (0, i))

    out = pl.pallas_call(
        functools.partial(mlp_al_eval_kernel, act_dtype=_ACT_DTYPE),
        out_shape=jax.ShapeDtypeStruct((out_shape, padded_batch), jnp.float32),
        grid=grid,
        in_specs=[x_spec] + w_specs,
        out_specs=out_spec,
        compiler_params=pltpu.CompilerParams(
            dimension_semantics=("parallel",)),
    )(xT, *weights)
    # (out_shape, padded_batch) -> (batch, out_shape); padded lanes dropped.
    return out[:, :batch].T


def _torch_linear_init(key, out_features, in_features):
    # PyTorch nn.Linear default: U(-1/sqrt(fan_in), +1/sqrt(fan_in)) on (out, in)
    bound = 1.0 / math.sqrt(in_features)
    return jax.random.uniform(key, (out_features, in_features), jnp.float32,
                              minval=-bound, maxval=bound)


def make_params(key, input_shape, neurons, out_shape, num_layers=3):
    """Only the weights actually used by the eval forward path (PyTorch layout).

    layer 0: f: (neurons, input_shape)      inv: (out_shape, neurons)
    layer l>0: f: (neurons, neurons)        inv: (neurons, neurons)
    last layer bridge b: (5*neurons, neurons), (neurons, 5*neurons)
    """
    assert num_layers == 3  # matches default in the reference module
    keys = jax.random.split(key, 8)
    wf0 = _torch_linear_init(keys[0], neurons, input_shape)
    wf1 = _torch_linear_init(keys[1], neurons, neurons)
    wf2 = _torch_linear_init(keys[2], neurons, neurons)
    wb2a = _torch_linear_init(keys[3], 5 * neurons, neurons)
    wb2b = _torch_linear_init(keys[4], neurons, 5 * neurons)
    winv2 = _torch_linear_init(keys[5], neurons, neurons)
    winv1 = _torch_linear_init(keys[6], neurons, neurons)
    winv0 = _torch_linear_init(keys[7], out_shape, neurons)
    # TODO(synk): training branch (g nets, one-hot targets, MSE local losses)
    # is a different mode of forward() and is not implemented here.
    return [wf0, wf1, wf2, wb2a, wb2b, winv2, winv1, winv0]


def _reference_eval(x, params, input_shape):
    """Pure-JAX reference mirroring the PyTorch eval forward, with bf16 matmul
    operands / f32 accumulation (same matmul numerics as the kernel) and
    f32 elementwise math + exp-form sigmoid."""
    def dot(a, w):
        return jnp.dot(a.astype(jnp.bfloat16), w.T.astype(jnp.bfloat16),
                       preferred_element_type=jnp.float32)

    def sig(z):
        return 1.0 / (1.0 + jnp.exp(-z))

    def elu(z):
        return jnp.where(z > 0, z, jnp.exp(jnp.minimum(z, 0.0)) - 1.0)

    wf0, wf1, wf2, wb2a, wb2b, winv2, winv1, winv0 = params
    h = x.reshape(-1, input_shape).astype(jnp.float32)
    h = elu(dot(h, wf0))
    h = elu(dot(h, wf1))
    h = elu(dot(h, wf2))
    t = sig(dot(h, wb2a))
    t = sig(dot(t, wb2b))
    t = sig(dot(t, winv2))
    t = sig(dot(t, winv1))
    return sig(dot(t, winv0))


if __name__ == "__main__":
    # small, module-consistent shapes: batch=8 samples of 32 features,
    # hidden "neurons"=32, 10-way classifier output.
    batch, input_shape, neurons, out_shape = 8, 32, 32, 10

    key = jax.random.PRNGKey(0)
    kx, kp = jax.random.split(key)
    x = jax.random.normal(kx, (batch, input_shape), jnp.float32)
    params = make_params(kp, input_shape, neurons, out_shape, num_layers=3)

    weights = prepare_params(params)  # one-time prep (bf16, PyTorch layout)
    out = mlp_classifier_eval(x, weights, input_shape, out_shape)
    out = jax.block_until_ready(out)

    ref = _reference_eval(x, params, input_shape)
    assert out.shape == (batch, out_shape)
    assert bool(jnp.all(jnp.isfinite(out)))
    # Tolerance depends on whether elementwise math ran in bf16 (v6e/v7x) or f32.
    tol = 2e-2 if _ACT_DTYPE == jnp.bfloat16 else 2e-3
    assert jnp.allclose(out, ref, atol=tol, rtol=tol), "mismatch vs reference"

    print("KERNEL_OK")
</pallas_src>

<mosaic_0001>
module attributes {stable_mosaic.version = 11 : i64} {
  func.func @mlp_al_eval_kernel(%arg0: i32, %arg1: memref<32x128xbf16, #tpu.memory_space<vmem>>, %arg2: memref<32x32xbf16, #tpu.memory_space<vmem>>, %arg3: memref<32x32xbf16, #tpu.memory_space<vmem>>, %arg4: memref<32x32xbf16, #tpu.memory_space<vmem>>, %arg5: memref<160x32xbf16, #tpu.memory_space<vmem>>, %arg6: memref<32x160xbf16, #tpu.memory_space<vmem>>, %arg7: memref<32x32xbf16, #tpu.memory_space<vmem>>, %arg8: memref<32x32xbf16, #tpu.memory_space<vmem>>, %arg9: memref<10x32xbf16, #tpu.memory_space<vmem>>, %arg10: memref<10x128xf32, #tpu.memory_space<vmem>>) attributes {dimension_semantics = [#tpu.dimension_semantics<parallel>], iteration_bounds = array<i64: 1>, scalar_prefetch = 0 : i64, scratch_operands = 0 : i64, tpu.core_type = #tpu.core_type<tc>, window_params = [{transform_indices = @transform_0, window_bounds = array<i64: 32, 128>}, {pipeline_mode = #tpu.pipeline_mode<synchronous>, transform_indices = @transform_1, window_bounds = array<i64: 32, 32>}, {pipeline_mode = #tpu.pipeline_mode<synchronous>, transform_indices = @transform_2, window_bounds = array<i64: 32, 32>}, {pipeline_mode = #tpu.pipeline_mode<synchronous>, transform_indices = @transform_3, window_bounds = array<i64: 32, 32>}, {pipeline_mode = #tpu.pipeline_mode<synchronous>, transform_indices = @transform_4, window_bounds = array<i64: 160, 32>}, {pipeline_mode = #tpu.pipeline_mode<synchronous>, transform_indices = @transform_5, window_bounds = array<i64: 32, 160>}, {pipeline_mode = #tpu.pipeline_mode<synchronous>, transform_indices = @transform_6, window_bounds = array<i64: 32, 32>}, {pipeline_mode = #tpu.pipeline_mode<synchronous>, transform_indices = @transform_7, window_bounds = array<i64: 32, 32>}, {pipeline_mode = #tpu.pipeline_mode<synchronous>, transform_indices = @transform_8, window_bounds = array<i64: 10, 32>}, {transform_indices = @transform_9, window_bounds = array<i64: 10, 128>}]} {
    %c0 = arith.constant 0 : index
    %c0_0 = arith.constant 0 : index
    %0 = vector.load %arg1[%c0, %c0_0] : memref<32x128xbf16, #tpu.memory_space<vmem>>, vector<32x128xbf16>
    %c0_1 = arith.constant 0 : index
    %c0_2 = arith.constant 0 : index
    %1 = vector.load %arg2[%c0_1, %c0_2] : memref<32x32xbf16, #tpu.memory_space<vmem>>, vector<32x32xbf16>
    %cst = arith.constant dense<0.000000e+00> : vector<32x128xf32>
    %2 = tpu.matmul %1, %0, %cst {dimension_numbers = #tpu.dot_dimension_numbers<[1], [0], [0], [1], [0, 0, 1, 1], [], []>} : vector<32x32xbf16>, vector<32x128xbf16>, vector<32x128xf32> -> vector<32x128xf32>
    %3 = arith.truncf %2 : vector<32x128xf32> to vector<32x128xbf16>
    %cst_3 = arith.constant 0.000000e+00 : bf16
    %4 = vector.broadcast %cst_3 : bf16 to vector<32x128xbf16>
    %5 = arith.cmpf ogt, %3, %4 : vector<32x128xbf16>
    %cst_4 = arith.constant 0.000000e+00 : bf16
    %6 = vector.broadcast %cst_4 : bf16 to vector<32x128xbf16>
    %7 = arith.minimumf %3, %6 : vector<32x128xbf16>
    %8 = math.exp %7 : vector<32x128xbf16>
    %cst_5 = arith.constant 1.000000e+00 : bf16
    %9 = vector.broadcast %cst_5 : bf16 to vector<32x128xbf16>
    %10 = arith.subf %8, %9 : vector<32x128xbf16>
    %11 = arith.select %5, %3, %10 : vector<32x128xi1>, vector<32x128xbf16>
    %c0_6 = arith.constant 0 : index
    %c0_7 = arith.constant 0 : index
    %12 = vector.load %arg3[%c0_6, %c0_7] : memref<32x32xbf16, #tpu.memory_space<vmem>>, vector<32x32xbf16>
    %cst_8 = arith.constant dense<0.000000e+00> : vector<32x128xf32>
    %13 = tpu.matmul %12, %11, %cst_8 {dimension_numbers = #tpu.dot_dimension_numbers<[1], [0], [0], [1], [0, 0, 1, 1], [], []>} : vector<32x32xbf16>, vector<32x128xbf16>, vector<32x128xf32> -> vector<32x128xf32>
    %14 = arith.truncf %13 : vector<32x128xf32> to vector<32x128xbf16>
    %cst_9 = arith.constant 0.000000e+00 : bf16
    %15 = vector.broadcast %cst_9 : bf16 to vector<32x128xbf16>
    %16 = arith.cmpf ogt, %14, %15 : vector<32x128xbf16>
    %cst_10 = arith.constant 0.000000e+00 : bf16
    %17 = vector.broadcast %cst_10 : bf16 to vector<32x128xbf16>
    %18 = arith.minimumf %14, %17 : vector<32x128xbf16>
    %19 = math.exp %18 : vector<32x128xbf16>
    %cst_11 = arith.constant 1.000000e+00 : bf16
    %20 = vector.broadcast %cst_11 : bf16 to vector<32x128xbf16>
    %21 = arith.subf %19, %20 : vector<32x128xbf16>
    %22 = arith.select %16, %14, %21 : vector<32x128xi1>, vector<32x128xbf16>
    %c0_12 = arith.constant 0 : index
    %c0_13 = arith.constant 0 : index
    %23 = vector.load %arg4[%c0_12, %c0_13] : memref<32x32xbf16, #tpu.memory_space<vmem>>, vector<32x32xbf16>
    %cst_14 = arith.constant dense<0.000000e+00> : vector<32x128xf32>
    %24 = tpu.matmul %23, %22, %cst_14 {dimension_numbers = #tpu.dot_dimension_numbers<[1], [0], [0], [1], [0, 0, 1, 1], [], []>} : vector<32x32xbf16>, vector<32x128xbf16>, vector<32x128xf32> -> vector<32x128xf32>
    %25 = arith.truncf %24 : vector<32x128xf32> to vector<32x128xbf16>
    %cst_15 = arith.constant 0.000000e+00 : bf16
    %26 = vector.broadcast %cst_15 : bf16 to vector<32x128xbf16>
    %27 = arith.cmpf ogt, %25, %26 : vector<32x128xbf16>
    %cst_16 = arith.constant 0.000000e+00 : bf16
    %28 = vector.broadcast %cst_16 : bf16 to vector<32x128xbf16>
    %29 = arith.minimumf %25, %28 : vector<32x128xbf16>
    %30 = math.exp %29 : vector<32x128xbf16>
    %cst_17 = arith.constant 1.000000e+00 : bf16
    %31 = vector.broadcast %cst_17 : bf16 to vector<32x128xbf16>
    %32 = arith.subf %30, %31 : vector<32x128xbf16>
    %33 = arith.select %27, %25, %32 : vector<32x128xi1>, vector<32x128xbf16>
    %c0_18 = arith.constant 0 : index
    %c0_19 = arith.constant 0 : index
    %34 = vector.load %arg5[%c0_18, %c0_19] : memref<160x32xbf16, #tpu.memory_space<vmem>>, vector<160x32xbf16>
    %cst_20 = arith.constant dense<0.000000e+00> : vector<160x128xf32>
    %35 = tpu.matmul %34, %33, %cst_20 {dimension_numbers = #tpu.dot_dimension_numbers<[1], [0], [0], [1], [0, 0, 1, 1], [], []>} : vector<160x32xbf16>, vector<32x128xbf16>, vector<160x128xf32> -> vector<160x128xf32>
    %36 = arith.truncf %35 : vector<160x128xf32> to vector<160x128xbf16>
    %cst_21 = arith.constant 5.000000e-01 : bf16
    %37 = vector.broadcast %cst_21 : bf16 to vector<160x128xbf16>
    %38 = arith.mulf %37, %36 : vector<160x128xbf16>
    %39 = math.tanh %38 : vector<160x128xbf16>
    %cst_22 = arith.constant 1.000000e+00 : bf16
    %40 = vector.broadcast %cst_22 : bf16 to vector<160x128xbf16>
    %41 = arith.addf %39, %40 : vector<160x128xbf16>
    %cst_23 = arith.constant 5.000000e-01 : bf16
    %42 = vector.broadcast %cst_23 : bf16 to vector<160x128xbf16>
    %43 = arith.mulf %42, %41 : vector<160x128xbf16>
    %c0_24 = arith.constant 0 : index
    %c0_25 = arith.constant 0 : index
    %44 = vector.load %arg6[%c0_24, %c0_25] : memref<32x160xbf16, #tpu.memory_space<vmem>>, vector<32x160xbf16>
    %cst_26 = arith.constant dense<0.000000e+00> : vector<32x128xf32>
    %45 = tpu.matmul %44, %43, %cst_26 {dimension_numbers = #tpu.dot_dimension_numbers<[1], [0], [0], [1], [0, 0, 1, 1], [], []>} : vector<32x160xbf16>, vector<160x128xbf16>, vector<32x128xf32> -> vector<32x128xf32>
    %46 = arith.truncf %45 : vector<32x128xf32> to vector<32x128xbf16>
    %cst_27 = arith.constant 5.000000e-01 : bf16
    %47 = vector.broadcast %cst_27 : bf16 to vector<32x128xbf16>
    %48 = arith.mulf %47, %46 : vector<32x128xbf16>
    %49 = math.tanh %48 : vector<32x128xbf16>
    %cst_28 = arith.constant 1.000000e+00 : bf16
    %50 = vector.broadcast %cst_28 : bf16 to vector<32x128xbf16>
    %51 = arith.addf %49, %50 : vector<32x128xbf16>
    %cst_29 = arith.constant 5.000000e-01 : bf16
    %52 = vector.broadcast %cst_29 : bf16 to vector<32x128xbf16>
    %53 = arith.mulf %52, %51 : vector<32x128xbf16>
    %c0_30 = arith.constant 0 : index
    %c0_31 = arith.constant 0 : index
    %54 = vector.load %arg7[%c0_30, %c0_31] : memref<32x32xbf16, #tpu.memory_space<vmem>>, vector<32x32xbf16>
    %cst_32 = arith.constant dense<0.000000e+00> : vector<32x128xf32>
    %55 = tpu.matmul %54, %53, %cst_32 {dimension_numbers = #tpu.dot_dimension_numbers<[1], [0], [0], [1], [0, 0, 1, 1], [], []>} : vector<32x32xbf16>, vector<32x128xbf16>, vector<32x128xf32> -> vector<32x128xf32>
    %56 = arith.truncf %55 : vector<32x128xf32> to vector<32x128xbf16>
    %cst_33 = arith.constant 5.000000e-01 : bf16
    %57 = vector.broadcast %cst_33 : bf16 to vector<32x128xbf16>
    %58 = arith.mulf %57, %56 : vector<32x128xbf16>
    %59 = math.tanh %58 : vector<32x128xbf16>
    %cst_34 = arith.constant 1.000000e+00 : bf16
    %60 = vector.broadcast %cst_34 : bf16 to vector<32x128xbf16>
    %61 = arith.addf %59, %60 : vector<32x128xbf16>
    %cst_35 = arith.constant 5.000000e-01 : bf16
    %62 = vector.broadcast %cst_35 : bf16 to vector<32x128xbf16>
    %63 = arith.mulf %62, %61 : vector<32x128xbf16>
    %c0_36 = arith.constant 0 : index
    %c0_37 = arith.constant 0 : index
    %64 = vector.load %arg8[%c0_36, %c0_37] : memref<32x32xbf16, #tpu.memory_space<vmem>>, vector<32x32xbf16>
    %cst_38 = arith.constant dense<0.000000e+00> : vector<32x128xf32>
    %65 = tpu.matmul %64, %63, %cst_38 {dimension_numbers = #tpu.dot_dimension_numbers<[1], [0], [0], [1], [0, 0, 1, 1], [], []>} : vector<32x32xbf16>, vector<32x128xbf16>, vector<32x128xf32> -> vector<32x128xf32>
    %66 = arith.truncf %65 : vector<32x128xf32> to vector<32x128xbf16>
    %cst_39 = arith.constant 5.000000e-01 : bf16
    %67 = vector.broadcast %cst_39 : bf16 to vector<32x128xbf16>
    %68 = arith.mulf %67, %66 : vector<32x128xbf16>
    %69 = math.tanh %68 : vector<32x128xbf16>
    %cst_40 = arith.constant 1.000000e+00 : bf16
    %70 = vector.broadcast %cst_40 : bf16 to vector<32x128xbf16>
    %71 = arith.addf %69, %70 : vector<32x128xbf16>
    %cst_41 = arith.constant 5.000000e-01 : bf16
    %72 = vector.broadcast %cst_41 : bf16 to vector<32x128xbf16>
    %73 = arith.mulf %72, %71 : vector<32x128xbf16>
    %c0_42 = arith.constant 0 : index
    %c0_43 = arith.constant 0 : index
    %74 = vector.load %arg9[%c0_42, %c0_43] : memref<10x32xbf16, #tpu.memory_space<vmem>>, vector<10x32xbf16>
    %cst_44 = arith.constant dense<0.000000e+00> : vector<10x128xf32>
    %75 = tpu.matmul %74, %73, %cst_44 {dimension_numbers = #tpu.dot_dimension_numbers<[1], [0], [0], [1], [0, 0, 1, 1], [], []>} : vector<10x32xbf16>, vector<32x128xbf16>, vector<10x128xf32> -> vector<10x128xf32>
    %76 = arith.truncf %75 : vector<10x128xf32> to vector<10x128xbf16>
    %cst_45 = arith.constant 5.000000e-01 : bf16
    %77 = vector.broadcast %cst_45 : bf16 to vector<10x128xbf16>
    %78 = arith.mulf %77, %76 : vector<10x128xbf16>
    %79 = math.tanh %78 : vector<10x128xbf16>
    %cst_46 = arith.constant 1.000000e+00 : bf16
    %80 = vector.broadcast %cst_46 : bf16 to vector<10x128xbf16>
    %81 = arith.addf %79, %80 : vector<10x128xbf16>
    %cst_47 = arith.constant 5.000000e-01 : bf16
    %82 = vector.broadcast %cst_47 : bf16 to vector<10x128xbf16>
    %83 = arith.mulf %82, %81 : vector<10x128xbf16>
    %84 = arith.extf %83 : vector<10x128xbf16> to vector<10x128xf32>
    %c0_48 = arith.constant 0 : index
    %c0_49 = arith.constant 0 : index
    %85 = vector.load %arg10[%c0_48, %c0_49] : memref<10x128xf32, #tpu.memory_space<vmem>>, vector<10x128xf32>
    tpu.vector_store %arg10[%c0_48, %c0_49], %84 {strides = array<i32>} : memref<10x128xf32, #tpu.memory_space<vmem>>, vector<10x128xf32>,
    return
  }
  func.func @transform_0(%arg0: i32) -> (i32, i32) {
    %c0_i32 = arith.constant 0 : i32
    %c0_i32_0 = arith.constant 0 : i32
    return %c0_i32, %arg0 : i32, i32
  }
  func.func @transform_1(%arg0: i32) -> (i32, i32) {
    %c0_i32 = arith.constant 0 : i32
    %c0_i32_0 = arith.constant 0 : i32
    %c0_i32_1 = arith.constant 0 : i32
    return %c0_i32, %c0_i32_0 : i32, i32
  }
  func.func @transform_2(%arg0: i32) -> (i32, i32) {
    %c0_i32 = arith.constant 0 : i32
    %c0_i32_0 = arith.constant 0 : i32
    %c0_i32_1 = arith.constant 0 : i32
    return %c0_i32, %c0_i32_0 : i32, i32
  }
  func.func @transform_3(%arg0: i32) -> (i32, i32) {
    %c0_i32 = arith.constant 0 : i32
    %c0_i32_0 = arith.constant 0 : i32
    %c0_i32_1 = arith.constant 0 : i32
    return %c0_i32, %c0_i32_0 : i32, i32
  }
  func.func @transform_4(%arg0: i32) -> (i32, i32) {
    %c0_i32 = arith.constant 0 : i32
    %c0_i32_0 = arith.constant 0 : i32
    %c0_i32_1 = arith.constant 0 : i32
    return %c0_i32, %c0_i32_0 : i32, i32
  }
  func.func @transform_5(%arg0: i32) -> (i32, i32) {
    %c0_i32 = arith.constant 0 : i32
    %c0_i32_0 = arith.constant 0 : i32
    %c0_i32_1 = arith.constant 0 : i32
    return %c0_i32, %c0_i32_0 : i32, i32
  }
  func.func @transform_6(%arg0: i32) -> (i32, i32) {
    %c0_i32 = arith.constant 0 : i32
    %c0_i32_0 = arith.constant 0 : i32
    %c0_i32_1 = arith.constant 0 : i32
    return %c0_i32, %c0_i32_0 : i32, i32
  }
  func.func @transform_7(%arg0: i32) -> (i32, i32) {
    %c0_i32 = arith.constant 0 : i32
    %c0_i32_0 = arith.constant 0 : i32
    %c0_i32_1 = arith.constant 0 : i32
    return %c0_i32, %c0_i32_0 : i32, i32
  }
  func.func @transform_8(%arg0: i32) -> (i32, i32) {
    %c0_i32 = arith.constant 0 : i32
    %c0_i32_0 = arith.constant 0 : i32
    %c0_i32_1 = arith.constant 0 : i32
    return %c0_i32, %c0_i32_0 : i32, i32
  }
  func.func @transform_9(%arg0: i32) -> (i32, i32) {
    %c0_i32 = arith.constant 0 : i32
    %c0_i32_0 = arith.constant 0 : i32
    return %c0_i32, %arg0 : i32, i32
  }
}

</mosaic_0001>

<bundles_post_ra>
// kernel: mlp_classifier_eval.1
= control target key start
LH: loop header
LB: loop body
LE: loop exit
PB: predicated region body
PF: predicated region fallthrough
CT: control target
= control target key end

     0   :  { %vm65_vm0 = vcmask 261120   ;;  %v1115_v10 = vmov 0   ;;  %v1116_v17 = vmov 1065369472   ;;  %vm1118_vm7 = vmmov 0   ;;  %s1301_s0 = inlined_call_operand.vmem [shape: bf16[32,128], index: 0, kind: input, shape index: {}]   ;;  %s1302_s1 = inlined_call_operand.vmem [shape: bf16[32,32], index: 1, kind: input, shape index: {}]   ;;  %s1303_s2 = inlined_call_operand.vmem [shape: bf16[32,32], index: 2, kind: input, shape index: {}]   ;;  %s1304_s3 = inlined_call_operand.vmem [shape: bf16[32,32], index: 3, kind: input, shape index: {}]   ;;  %s1305_s4 = inlined_call_operand.vmem [shape: bf16[160,32], index: 4, kind: input, shape index: {}]   ;;  %s1306_s5 = inlined_call_operand.vmem [shape: bf16[32,160], index: 5, kind: input, shape index: {}]   ;;  %s1307_s6 = inlined_call_operand.vmem [shape: bf16[32,32], index: 6, kind: input, shape index: {}]   ;;  %s1308_s7 = inlined_call_operand.vmem [shape: bf16[32,32], index: 7, kind: input, shape index: {}]   ;;  %s1309_s8 = inlined_call_operand.vmem [shape: bf16[10,32], index: 8, kind: input, shape index: {}]   ;;  %s1310_s9 = inlined_call_operand.vmem [shape: f32[10,128], index: 9, kind: output, shape index: {}]  }
   0x1   :  { %v1040_v0 = vld [vmem:[%s1301_s0 + $0x8] sm:$0xff]   ;;  %v1041_v1 = vld [vmem:[%s1301_s0] sm:$0xff]   ;;  %v1050_v60 = vld [vmem:[%s1305_s4 + $0x10] sm:$0xff]  }
   0x2   :  { %964 = vmatprep.subr.bf16.mxu0 %v1040_v0  ;;  %v1042_v2 = vld [vmem:[%s1302_s1] sm:$0xff]   ;;  %v1043_v3 = vld [vmem:[%s1302_s1 + $0x8] sm:$0xff]   ;;  %v1051_v61 = vld [vmem:[%s1305_s4 + $0x18] sm:$0xff]  }
   0x3   :  { %965 = vmatpush3.bf16.msra.mxu0 %v1040_v0  ;;  %968 = vmatprep.mubr.msk.bf16.mxu0 %vm65_vm0, %v1042_v2  ;;  %v1044_v4 = vld [vmem:[%s1303_s2] sm:$0xff]   ;;  %v1045_v23 = vld [vmem:[%s1303_s2 + $0x8] sm:$0xff]   ;;  %v1054_v0 = vld [vmem:[%s1305_s4 + $0x30] sm:$0xff]  }
   0x4   :  { %966 = vmatprep.subr.bf16.mxu0 %v1041_v1  ;;  %976 = vmatprep.mubr.msk.bf16.mxu1 %vm65_vm0, %v1044_v4  ;;  %v1046_v24 = vld [vmem:[%s1304_s3] sm:$0xff]   ;;  %v1047_v41 = vld [vmem:[%s1304_s3 + $0x8] sm:$0xff]  }
   0x5   :  { %v1048_v42 = vld [vmem:[%s1305_s4] sm:$0xff]   ;;  %v1049_v59 = vld [vmem:[%s1305_s4 + $0x8] sm:$0xff]  }
   0x6   :  { %v1052_v62 = vld [vmem:[%s1305_s4 + $0x20] sm:$0xff]   ;;  %v1053_v63 = vld [vmem:[%s1305_s4 + $0x28] sm:$0xff]  }
   0x7   :  { %967 = vmatpush3.bf16.msra.mxu0 %v1041_v1  ;;  %v1055_v1 = vld [vmem:[%s1305_s4 + $0x38] sm:$0xff]   ;;  %v1056_v2 = vld [vmem:[%s1305_s4 + $0x40] sm:$0xff]  }
   0x8   :  { %v1058_v4 = vld [vmem:[%s1306_s5 + $0x4] ss:$8 sps:$4 sm:$0xff]  }
   0xa   :  { %969 = vmatmul.mubr.msk.bf16.vlgmr.msra.gmra.mxu0 %vm65_vm0, %v1043_v3  ;;  %v1057_v3 = vld [vmem:[%s1305_s4 + $0x48] sm:$0xff]  }
   0xb   :  { %984 = vmatprep.mubr.msk.bf16.mxu0 %vm65_vm0, %v1046_v24 }
  0xca   :  { %v970_v5 = vpop.f32.mrf.mxu0 }
  0xcc   :  { %v106_v6 = vpop.f32.mrf.mxu0 }
  0xce   :  { %v971_v7 = vpop.f32.mrf.mxu0 }
  0xcf   :  { %v122_v8 = vpack.c.bf16 %v971_v7, %v970_v5 }
  0xd0   :  { %v109_v9 = vpop.f32.mrf.mxu0 }
  0xd1   :  { %v126_v11 = vmin.bf16 %v1115_v10, %v122_v8  ;;  %v121_v12 = vpack.c.bf16 %v109_v9, %v106_v6  ;;  %vm124_vm1 = vcmp.gt.bf16.partialorder %v122_v8, 0 }
  0xd3   :  { %v131_v13 = vmul.bf16 1069105081, %v126_v11  ;;  %v125_v14 = vmin.bf16 %v1115_v10, %v121_v12  ;;  %vm123_vm2 = vcmp.gt.bf16.partialorder %v121_v12, 0 }
  0xd5   :  { %1069 = vpow.bf16 %v131_v13  ;;  %v128_v15 = vmul.bf16 1069105081, %v125_v14 }
  0xd7   :  { %1071 = vpow.bf16 %v128_v15 }
  0xe3   :  { %v1070_v16 = vpop.eup %1069 }
  0xe4   :  { %v134_v18 = vsub.bf16 %v1070_v16, %v1116_v17 }
  0xe5   :  { %v1072_v19 = vpop.eup %1071 }
  0xe6   :  { %v136_v20 = vsel %vm124_vm1, %v122_v8, %v134_v18  ;;  %v133_v21 = vsub.bf16 %v1072_v19, %v1116_v17 }
  0xe7   :  { %972 = vmatprep.subr.bf16.mxu1 %v136_v20 }
  0xe8   :  { %973 = vmatpush3.bf16.msra.mxu1 %v136_v20  ;;  %v135_v22 = vsel %vm123_vm2, %v121_v12, %v133_v21 }
  0xe9   :  { %974 = vmatprep.subr.bf16.mxu1 %v135_v22 }
  0xec   :  { %975 = vmatpush3.bf16.msra.mxu1 %v135_v22 }
  0xef   :  { %977 = vmatmul.mubr.msk.bf16.vlgmr.msra.gmra.mxu1 %vm65_vm0, %v1045_v23 }
  0xf0   :  { %992 = vmatprep.mubr.msk.bf16.mxu1 %vm65_vm0, %v1048_v42 }
 0x1af   :  { %v978_v25 = vpop.f32.mrf.mxu1 }
 0x1b1   :  { %v191_v26 = vpop.f32.mrf.mxu1 }
 0x1b3   :  { %v979_v27 = vpop.f32.mrf.mxu1 }
 0x1b4   :  { %v207_v28 = vpack.c.bf16 %v979_v27, %v978_v25 }
 0x1b5   :  { %v194_v29 = vpop.f32.mrf.mxu1 }
 0x1b6   :  { %v211_v30 = vmin.bf16 %v1115_v10, %v207_v28  ;;  %v206_v31 = vpack.c.bf16 %v194_v29, %v191_v26  ;;  %vm209_vm3 = vcmp.gt.bf16.partialorder %v207_v28, 0 }
 0x1b8   :  { %v216_v32 = vmul.bf16 1069105081, %v211_v30  ;;  %v210_v33 = vmin.bf16 %v1115_v10, %v206_v31  ;;  %vm208_vm4 = vcmp.gt.bf16.partialorder %v206_v31, 0 }
 0x1ba   :  { %1073 = vpow.bf16 %v216_v32  ;;  %v213_v34 = vmul.bf16 1069105081, %v210_v33 }
 0x1bc   :  { %1075 = vpow.bf16 %v213_v34 }
 0x1c8   :  { %v1074_v35 = vpop.eup %1073 }
 0x1c9   :  { %v219_v36 = vsub.bf16 %v1074_v35, %v1116_v17 }
 0x1ca   :  { %v1076_v37 = vpop.eup %1075 }
 0x1cb   :  { %v221_v38 = vsel %vm209_vm3, %v207_v28, %v219_v36  ;;  %v218_v39 = vsub.bf16 %v1076_v37, %v1116_v17 }
 0x1cc   :  { %980 = vmatprep.subr.bf16.mxu0 %v221_v38 }
 0x1cd   :  { %981 = vmatpush3.bf16.msra.mxu0 %v221_v38  ;;  %v220_v40 = vsel %vm208_vm4, %v206_v31, %v218_v39 }
 0x1ce   :  { %982 = vmatprep.subr.bf16.mxu0 %v220_v40 }
 0x1d1   :  { %983 = vmatpush3.bf16.msra.mxu0 %v220_v40 }
 0x1d2   :  { %598 = vmatprep.subr.bf16.mxu0 %v1115_v10 }
 0x1d4   :  { %985 = vmatmul.mubr.msk.bf16.vlgmr.msra.gmra.mxu0 %vm65_vm0, %v1047_v41 }
 0x1d5   :  { %917 = vmatprep.mubr.msk.bf16.mxu0 %vm65_vm0, %v1058_v4 }
 0x294   :  { %v986_v43 = vpop.f32.mrf.mxu0 }
 0x296   :  { %v276_v44 = vpop.f32.mrf.mxu0 }
 0x298   :  { %v987_v45 = vpop.f32.mrf.mxu0 }
 0x299   :  { %v292_v46 = vpack.c.bf16 %v987_v45, %v986_v43 }
 0x29a   :  { %v279_v47 = vpop.f32.mrf.mxu0 }
 0x29b   :  { %v296_v48 = vmin.bf16 %v1115_v10, %v292_v46  ;;  %v291_v49 = vpack.c.bf16 %v279_v47, %v276_v44  ;;  %vm294_vm5 = vcmp.gt.bf16.partialorder %v292_v46, 0 }
 0x29d   :  { %v301_v50 = vmul.bf16 1069105081, %v296_v48  ;;  %v295_v51 = vmin.bf16 %v1115_v10, %v291_v49  ;;  %vm293_vm6 = vcmp.gt.bf16.partialorder %v291_v49, 0 }
 0x29f   :  { %1077 = vpow.bf16 %v301_v50  ;;  %v298_v52 = vmul.bf16 1069105081, %v295_v51 }
 0x2a1   :  { %1079 = vpow.bf16 %v298_v52 }
 0x2ad   :  { %v1078_v53 = vpop.eup %1077 }
 0x2ae   :  { %v304_v54 = vsub.bf16 %v1078_v53, %v1116_v17 }
 0x2af   :  { %v1080_v55 = vpop.eup %1079 }
 0x2b0   :  { %v306_v56 = vsel %vm294_vm5, %v292_v46, %v304_v54  ;;  %v303_v57 = vsub.bf16 %v1080_v55, %v1116_v17 }
 0x2b1   :  { %988 = vmatprep.subr.bf16.mxu1 %v306_v56 }
 0x2b2   :  { %989 = vmatpush3.bf16.msra.mxu1 %v306_v56  ;;  %v305_v58 = vsel %vm293_vm6, %v291_v49, %v303_v57 }
 0x2b3   :  { %990 = vmatprep.subr.bf16.mxu1 %v305_v58 }
 0x2b6   :  { %991 = vmatpush3.bf16.msra.mxu1 %v305_v58 }
 0x2b9   :  { %993 = vmatmul.mubr.msk.bf16.vlgmr.msra.gmra.mxu1 %vm65_vm0, %v1049_v59 }
 0x2ba   :  { %996 = vmatprep.mubr.msk.bf16.mxu1 %vm65_vm0, %v1050_v60 }
 0x2c1   :  { %997 = vmatmul.mubr.msk.bf16.gmra.mxu1 %vm65_vm0, %v1051_v61 }
 0x2c2   :  { %1000 = vmatprep.mubr.msk.bf16.mxu1 %vm65_vm0, %v1052_v62 }
 0x2c9   :  { %1001 = vmatmul.mubr.msk.bf16.gmra.mxu1 %vm65_vm0, %v1053_v63 }
 0x2ca   :  { %1004 = vmatprep.mubr.msk.bf16.mxu1 %vm65_vm0, %v1054_v0 }
 0x2d1   :  { %1005 = vmatmul.mubr.msk.bf16.gmra.mxu1 %vm65_vm0, %v1055_v1 }
 0x2d2   :  { %1008 = vmatprep.mubr.msk.bf16.mxu1 %vm65_vm0, %v1056_v2 }
 0x2d9   :  { %1009 = vmatmul.mubr.msk.bf16.gmra.mxu1 %vm65_vm0, %v1057_v3 }
 0x379   :  { %v994_v5 = vpop.f32.mrf.mxu1 }
 0x37b   :  { %v441_v6 = vpop.f32.mrf.mxu1 }
 0x37d   :  { %v995_v7 = vpop.f32.mrf.mxu1 }
 0x37e   :  { %v521_v34 = vpack.c.bf16 %v995_v7, %v994_v5 }
 0x37f   :  { %v444_v8 = vpop.f32.mrf.mxu1 }
 0x380   :  { %v531_v40 = vmul.bf16 1056980736, %v521_v34  ;;  %v520_v41 = vpack.c.bf16 %v444_v8, %v441_v6  ;;  %v1065_v34 = vld [vmem:[%s1307_s6 + $0x8] sm:$0xff]  }
 0x381   :  { %v998_v9 = vpop.f32.mrf.mxu1 }
 0x382   :  { %v530_v46 = vmul.bf16 1056980736, %v520_v41 }
 0x383   :  { %v457_v11 = vpop.f32.mrf.mxu1 }
 0x385   :  { %v999_v12 = vpop.f32.mrf.mxu1 }
 0x386   :  { %v523_v29 = vpack.c.bf16 %v999_v12, %v998_v9 }
 0x387   :  { %v460_v13 = vpop.f32.mrf.mxu1 }
 0x388   :  { %v533_v31 = vmul.bf16 1056980736, %v523_v29  ;;  %v522_v32 = vpack.c.bf16 %v460_v13, %v457_v11  ;;  %v1060_v13 = vld [vmem:[%s1306_s5] ss:$8 sps:$4 sm:$0xff]  }
 0x389   :  { %v1002_v14 = vpop.f32.mrf.mxu1 }
 0x38a   :  { %v532_v35 = vmul.bf16 1056980736, %v522_v32 }
 0x38b   :  { %v473_v15 = vpop.f32.mrf.mxu1 }
 0x38d   :  { %v1003_v16 = vpop.f32.mrf.mxu1 }
 0x38e   :  { %v525_v21 = vpack.c.bf16 %v1003_v16, %v1002_v14  ;;  %v1061_v14 = vld [vmem:[%s1306_s5 + $0x14] ss:$8 sps:$4 sm:$0xff]  }
 0x38f   :  { %v476_v17 = vpop.f32.mrf.mxu1 }
 0x390   :  { %v535_v26 = vmul.bf16 1056980736, %v525_v21  ;;  %v524_v27 = vpack.c.bf16 %v476_v17, %v473_v15  ;;  %v1063_v15 = vld [vmem:[%s1306_s5 + $0x10] ss:$8 sps:$4 sm:$0xff]  }
 0x391   :  { %v1006_v18 = vpop.f32.mrf.mxu1 }
 0x392   :  { %v534_v30 = vmul.bf16 1056980736, %v524_v27 }
 0x393   :  { %v489_v19 = vpop.f32.mrf.mxu1 }
 0x395   :  { %v1007_v20 = vpop.f32.mrf.mxu1 }
 0x396   :  { %v527_v22 = vpack.c.bf16 %v1007_v20, %v1006_v18 }
 0x397   :  { %v492_v23 = vpop.f32.mrf.mxu1 }
 0x398   :  { %v537_v24 = vmul.bf16 1056980736, %v527_v22  ;;  %v526_v25 = vpack.c.bf16 %v492_v23, %v489_v19 }
 0x399   :  { %v1010_v33 = vpop.f32.mrf.mxu1 }
 0x39a   :  { %1081 = vtanh.bf16 %v537_v24  ;;  %v536_v28 = vmul.bf16 1056980736, %v526_v25 }
 0x39b   :  { %v505_v36 = vpop.f32.mrf.mxu1 }
 0x39c   :  { %1083 = vtanh.bf16 %v536_v28 }
 0x39d   :  { %1085 = vtanh.bf16 %v535_v26  ;;  %v1011_v44 = vpop.f32.mrf.mxu1 }
 0x39e   :  { %1087 = vtanh.bf16 %v534_v30  ;;  %v529_v47 = vpack.c.bf16 %v1011_v44, %v1010_v33 }
 0x39f   :  { %1089 = vtanh.bf16 %v533_v31  ;;  %v508_v50 = vpop.f32.mrf.mxu1 }
 0x3a0   :  { %1091 = vtanh.bf16 %v532_v35  ;;  %v539_v52 = vmul.bf16 1056980736, %v529_v47  ;;  %v528_v53 = vpack.c.bf16 %v508_v50, %v505_v36  ;;  %v1066_v35 = vld [vmem:[%s1308_s7] sm:$0xff]   ;;  %v1067_v50 = vld [vmem:[%s1308_s7 + $0x8] sm:$0xff]  }
 0x3a1   :  { %1093 = vtanh.bf16 %v531_v40 }
 0x3a2   :  { %1095 = vtanh.bf16 %v530_v46  ;;  %v538_v57 = vmul.bf16 1056980736, %v528_v53 }
 0x3a3   :  { %1097 = vtanh.bf16 %v539_v52 }
 0x3a4   :  { %1099 = vtanh.bf16 %v538_v57 }
 0x3a8   :  { %v1082_v37 = vpop.eup %1081 }
 0x3a9   :  { %v557_v38 = vadd.bf16 1065369472, %v1082_v37 }
 0x3aa   :  { %v1084_v39 = vpop.eup %1083 }
 0x3ab   :  { %v567_v42 = vmul.bf16 1056980736, %v557_v38  ;;  %v556_v43 = vadd.bf16 1065369472, %v1084_v39  ;;  %v1086_v45 = vpop.eup %1085 }
 0x3ac   :  { %v555_v48 = vadd.bf16 1065369472, %v1086_v45  ;;  %v1088_v51 = vpop.eup %1087 }
 0x3ad   :  { %599 = vmatpush1.bf16.msra.mxu0 %v567_v42  ;;  %v566_v49 = vmul.bf16 1056980736, %v556_v43  ;;  %v554_v55 = vadd.bf16 1065369472, %v1088_v51  ;;  %v1090_v56 = vpop.eup %1089  ;;  %v1117_v51 = vmov 0.0  }
 0x3ae   :  { %600 = vmatprep.subr.bf16.mxu0 %v1115_v10  ;;  %v565_v54 = vmul.bf16 1056980736, %v555_v48  ;;  %v553_v58 = vadd.bf16 1065369472, %v1090_v56  ;;  %v1092_v60 = vpop.eup %1091 }
 0x3af   :  { %v564_v59 = vmul.bf16 1056980736, %v554_v55  ;;  %v552_v62 = vadd.bf16 1065369472, %v1092_v60  ;;  %v1094_v63 = vpop.eup %1093 }
 0x3b0   :  { %v563_v61 = vmul.bf16 1056980736, %v553_v58  ;;  %v551_v0 = vadd.bf16 1065369472, %v1094_v63  ;;  %v1096_v2 = vpop.eup %1095 }
 0x3b1   :  { %601 = vmatpush1.bf16.msra.mxu0 %v566_v49  ;;  %v562_v1 = vmul.bf16 1056980736, %v552_v62  ;;  %v550_v4 = vadd.bf16 1065369472, %v1096_v2  ;;  %v1098_v5 = vpop.eup %1097  ;;  %v1068_v2 = vld [vmem:[%s1309_s8] sm:$0x1f]  }
 0x3b2   :  { %602 = vmatprep.subr.bf16.mxu0 %v1115_v10  ;;  %v561_v3 = vmul.bf16 1056980736, %v551_v0  ;;  %v559_v7 = vadd.bf16 1065369472, %v1098_v5  ;;  %v1100_v8 = vpop.eup %1099 }
 0x3b3   :  { %v560_v6 = vmul.bf16 1056980736, %v550_v4  ;;  %v558_v11 = vadd.bf16 1065369472, %v1100_v8 }
 0x3b4   :  { %v569_v9 = vmul.bf16 1056980736, %v559_v7 }
 0x3b5   :  { %603 = vmatpush1.bf16.msra.mxu0 %v565_v54  ;;  %v568_v12 = vmul.bf16 1056980736, %v558_v11 }
 0x3b6   :  { %604 = vmatprep.subr.bf16.mxu0 %v1115_v10 }
 0x3b9   :  { %605 = vmatpush1.bf16.msra.mxu0 %v564_v59 }
 0x3ba   :  { %606 = vmatprep.subr.bf16.mxu0 %v1115_v10 }
 0x3bd   :  { %607 = vmatpush1.bf16.msra.mxu0 %v563_v61 }
 0x3be   :  { %608 = vmatprep.subr.bf16.mxu0 %v1115_v10 }
 0x3c1   :  { %609 = vmatpush1.bf16.msra.mxu0 %v562_v1 }
 0x3c2   :  { %610 = vmatprep.subr.bf16.mxu0 %v1115_v10 }
 0x3c5   :  { %611 = vmatpush1.bf16.msra.mxu0 %v561_v3 }
 0x3c6   :  { %612 = vmatprep.subr.bf16.mxu0 %v1115_v10 }
 0x3c9   :  { %613 = vmatpush1.bf16.msra.mxu0 %v560_v6 }
 0x3ca   :  { %626 = vmatprep.subr.bf16.mxu0 %v1115_v10 }
 0x3cd   :  { %627 = vmatpush2.bf16.msra.mxu0 %v569_v9 }
 0x3ce   :  { %628 = vmatprep.subr.bf16.mxu0 %v1115_v10  ;;  %v1064_v10 = vld [vmem:[%s1307_s6] sm:$0xff]  }
 0x3cf   :  { %1016 = vmatprep.mubr.msk.bf16.mxu1 %vm65_vm0, %v1064_v10 }
 0x3d1   :  { %629 = vmatpush2.bf16.msra.mxu0 %v568_v12 }
 0x3d2   :  { %1028 = vmatprep.subr.bf16.mxu0 %v1117_v51 }
 0x3d4   :  { %631 = vmatmul.mubr.bf16.vlgmr.msra.gmra.mxu0 %v1060_v13 }
 0x3d5   :  { %918 = vmatprep.mubr.msk.bf16.mxu0 %vm65_vm0, %v1061_v14 }
 0x3dc   :  { %639 = vmatmul.mubr.bf16.gmra.mxu0 %v1063_v15 }
 0x3dd   :  { %1032 = vmatprep.mubr.msk.bf16.mxu0 %vm1118_vm7, %v1117_v51 }
 0x494   :  { %v632_v16 = vpop.f32.mrf.mxu0 }
 0x496   :  { %v634_v17 = vpop.f32.mrf.mxu0 }
 0x498   :  { %v635_v18 = vpop.f32.mrf.mxu0 }
 0x499   :  { %v647_v20 = vpack.c.bf16 %v635_v18, %v632_v16 }
 0x49a   :  { %v637_v19 = vpop.f32.mrf.mxu0 }
 0x49b   :  { %v649_v23 = vmul.bf16 1056980736, %v647_v20 }
 0x49c   :  { %v640_v21 = vpop.f32.mrf.mxu0 }
 0x49d   :  { %1101 = vtanh.bf16 %v649_v23 }
 0x49e   :  { %v642_v22 = vpop.f32.mrf.mxu0 }
 0x4a0   :  { %v643_v24 = vpop.f32.mrf.mxu0 }
 0x4a1   :  { %v648_v25 = vpack.c.bf16 %v643_v24, %v640_v21 }
 0x4a2   :  { %v645_v26 = vpop.f32.mrf.mxu0 }
 0x4a3   :  { %v650_v27 = vmul.bf16 1056980736, %v648_v25 }
 0x4a5   :  { %1103 = vtanh.bf16 %v650_v27 }
 0x4ab   :  { %v1102_v28 = vpop.eup %1101 }
 0x4ac   :  { %v653_v31 = vadd.bf16 1065369472, %v1102_v28 }
 0x4ae   :  { %v655_v33 = vmul.bf16 1056980736, %v653_v31 }
 0x4b3   :  { %v1104_v29 = vpop.eup %1103 }
 0x4b4   :  { %v654_v30 = vadd.bf16 1065369472, %v1104_v29 }
 0x4b6   :  { %v656_v32 = vmul.bf16 1056980736, %v654_v30 }
 0x4b8   :  { %1012 = vmatprep.subr.bf16.mxu1 %v656_v32 }
 0x4b9   :  { %1013 = vmatpush3.bf16.msra.mxu1 %v656_v32 }
 0x4ba   :  { %1014 = vmatprep.subr.bf16.mxu1 %v655_v33 }
 0x4bd   :  { %1015 = vmatpush3.bf16.msra.mxu1 %v655_v33 }
 0x4c0   :  { %1017 = vmatmul.mubr.msk.bf16.vlgmr.msra.gmra.mxu1 %vm65_vm0, %v1065_v34 }
 0x4c1   :  { %1024 = vmatprep.mubr.msk.bf16.mxu1 %vm65_vm0, %v1066_v35 }
 0x580   :  { %v1018_v36 = vpop.f32.mrf.mxu1 }
 0x582   :  { %v711_v37 = vpop.f32.mrf.mxu1 }
 0x584   :  { %v1019_v38 = vpop.f32.mrf.mxu1 }
 0x585   :  { %v727_v39 = vpack.c.bf16 %v1019_v38, %v1018_v36 }
 0x586   :  { %v714_v40 = vpop.f32.mrf.mxu1 }
 0x587   :  { %v729_v41 = vmul.bf16 1056980736, %v727_v39  ;;  %v726_v42 = vpack.c.bf16 %v714_v40, %v711_v37 }
 0x589   :  { %1105 = vtanh.bf16 %v729_v41  ;;  %v728_v43 = vmul.bf16 1056980736, %v726_v42 }
 0x58b   :  { %1107 = vtanh.bf16 %v728_v43 }
 0x597   :  { %v1106_v44 = vpop.eup %1105 }
 0x598   :  { %v733_v45 = vadd.bf16 1065369472, %v1106_v44 }
 0x599   :  { %v1108_v46 = vpop.eup %1107 }
 0x59a   :  { %v735_v47 = vmul.bf16 1056980736, %v733_v45  ;;  %v732_v48 = vadd.bf16 1065369472, %v1108_v46 }
 0x59c   :  { %1020 = vmatprep.subr.bf16.mxu1 %v735_v47  ;;  %v734_v49 = vmul.bf16 1056980736, %v732_v48 }
 0x59d   :  { %1021 = vmatpush3.bf16.msra.mxu1 %v735_v47 }
 0x59e   :  { %1022 = vmatprep.subr.bf16.mxu1 %v734_v49 }
 0x5a1   :  { %1023 = vmatpush3.bf16.msra.mxu1 %v734_v49 }
 0x5a4   :  { %1025 = vmatmul.mubr.msk.bf16.vlgmr.msra.gmra.mxu1 %vm65_vm0, %v1067_v50 }
 0x664   :  { %v1026_v52 = vpop.f32.mrf.mxu1 }
 0x666   :  { %v790_v53 = vpop.f32.mrf.mxu1 }
 0x668   :  { %v1027_v54 = vpop.f32.mrf.mxu1 }
 0x669   :  { %v806_v55 = vpack.c.bf16 %v1027_v54, %v1026_v52 }
 0x66a   :  { %v793_v56 = vpop.f32.mrf.mxu1 }
 0x66b   :  { %v808_v57 = vmul.bf16 1056980736, %v806_v55  ;;  %v805_v58 = vpack.c.bf16 %v793_v56, %v790_v53 }
 0x66d   :  { %1109 = vtanh.bf16 %v808_v57  ;;  %v807_v59 = vmul.bf16 1056980736, %v805_v58 }
 0x66f   :  { %1111 = vtanh.bf16 %v807_v59 }
 0x67b   :  { %v1110_v60 = vpop.eup %1109 }
 0x67c   :  { %v812_v61 = vadd.bf16 1065369472, %v1110_v60 }
 0x67d   :  { %v1112_v62 = vpop.eup %1111 }
 0x67e   :  { %v814_v63 = vmul.bf16 1056980736, %v812_v61  ;;  %v811_v0 = vadd.bf16 1065369472, %v1112_v62 }
 0x680   :  { %1029 = vmatpush3.bf16.msra.mxu0 %v814_v63  ;;  %v813_v1 = vmul.bf16 1056980736, %v811_v0 }
 0x681   :  { %1030 = vmatprep.subr.bf16.mxu0 %v1117_v51 }
 0x684   :  { %1031 = vmatpush3.bf16.msra.mxu0 %v813_v1 }
 0x687   :  { %1033 = vmatmul.mubr.msk.bf16.vlgmr.msra.gmra.mxu0 %vm65_vm0, %v1068_v2 }
 0x747   :  { %v859_v3 = vpop.f32.mrf.mxu0 }
 0x749   :  { %v1034_v4 = vpop.f32.mrf.mxu0 }
 0x74b   :  { %v862_v5 = vpop.f32.mrf.mxu0 }
 0x74c   :  { %v866_v6 = vpack.c.bf16 %v862_v5, %v859_v3 }
 0x74d   :  { %v1035_v7 = vpop.f32.mrf.mxu0 }
 0x74e   :  { %v867_v8 = vmul.bf16 1056980736, %v866_v6 }
 0x750   :  { %1113 = vtanh.bf16 %v867_v8 }
 0x75e   :  { %v1114_v9 = vpop.eup %1113 }
 0x75f   :  { %v869_v11 = vadd.bf16 1065369472, %v1114_v9 }
 0x761   :  { %v870_v12 = vmul.bf16 1056980736, %v869_v11 }
 0x763   :  { %v871_v13 = vunpack.c.l.bf16 %v870_v12  ;;  %v872_v14 = vunpack.c.h.bf16 %v870_v12 }
 0x765   :  { %873 = vst [vmem:[%s1310_s9] sm:$0xff] %v871_v13  ;;  %874 = vst [vmem:[%s1310_s9 + $0x8] sm:$0x3] %v872_v14 }

</bundles_post_ra>
